<compile_context>
chip_gen: v7x
topology: tpu7x:2x2x1
jax: 0.10.0
libtpu: 0.0.40
codegen_flags: <defaults>
</compile_context>

<pallas_src>
import functools
import math

import jax
import jax.numpy as jnp
from jax import lax
from jax.experimental import pallas as pl
from jax.experimental.pallas import tpu as pltpu


def _layernorm(v, g, b, eps=1e-5):
    m = jnp.mean(v, axis=-1, keepdims=True)
    c = v - m
    var = jnp.mean(c * c, axis=-1, keepdims=True)
    return c * lax.rsqrt(var + eps) * g + b


def _single_buffered_spec(block_shape, index_map):
    # Weights / per-batch K-V are fetched at most once per batch element;
    # single buffering halves their VMEM footprint (decisive on v7x's 64 MiB).
    try:
        return pl.BlockSpec(block_shape, index_map, pipeline_mode=pl.Buffered(1))
    except TypeError:  # older Pallas without pipeline_mode — fall back gracefully
        return pl.BlockSpec(block_shape, index_map)


# ---------------------------------------------------------------------------
# Stage 1: per-batch K/V projection kernel (K stored pre-transposed).
# ---------------------------------------------------------------------------
def kv_project_kernel(src_ref, wk_ref, wv_ref, kT_ref, v_ref, *, heads):
    S = src_ref.shape[-1] // heads
    s = src_ref[...].astype(jnp.bfloat16)
    k = jnp.dot(s, wk_ref[...], preferred_element_type=jnp.float32)
    v = jnp.dot(s, wv_ref[...], preferred_element_type=jnp.float32)
    for h in range(heads):
        # transpose once at K-write time (XLU), never again per query tile
        kT_ref[h] = k[:, h * S:(h + 1) * S].T.astype(jnp.bfloat16)   # (S, Tsrc)
        v_ref[h] = v[:, h * S:(h + 1) * S].astype(jnp.bfloat16)      # (Tsrc, S)


def _kv_project(src, wk, wv, *, heads, vmem_limit):
    # TODO(synk): tile over Tsrc for very long sequences (full (Tsrc,E) block
    # per batch element is fine at these sizes).
    B, Tsrc, E = src.shape
    S = E // heads
    kern = functools.partial(kv_project_kernel, heads=heads)
    return pl.pallas_call(
        kern,
        out_shape=(jax.ShapeDtypeStruct((B, heads, S, Tsrc), jnp.bfloat16),
                   jax.ShapeDtypeStruct((B, heads, Tsrc, S), jnp.bfloat16)),
        grid=(B,),
        in_specs=[
            pl.BlockSpec((None, Tsrc, E), lambda b: (b, 0, 0)),
            _single_buffered_spec((E, E), lambda b: (0, 0)),
            _single_buffered_spec((E, E), lambda b: (0, 0)),
        ],
        out_specs=(
            pl.BlockSpec((None, heads, S, Tsrc), lambda b: (b, 0, 0, 0)),
            pl.BlockSpec((None, heads, Tsrc, S), lambda b: (b, 0, 0, 0)),
        ),
        compiler_params=pltpu.CompilerParams(
            dimension_semantics=("parallel",),
            vmem_limit_bytes=vmem_limit,
        ),
    )(src, wk, wv)


# ---------------------------------------------------------------------------
# Stage 2: main fused kernel, grid = (batch, query_tile), both axes parallel.
# ---------------------------------------------------------------------------
def conditional_block_kernel(
    x_ref,
    kT_sa_ref, v_sa_ref, kT_ca_ref, v_ca_ref,
    wq_s_ref, wu_s_ref, bu_s_ref,
    wq_c_ref, wu_c_ref, bu_c_ref,
    g1_ref, b1_ref, g2_ref, b2_ref, g3_ref, b3_ref,
    wff1_ref, bff1_ref, wff2_ref, bff2_ref,
    o_ref,
    m_sc, l_sc, acc_sc,
    *, heads, scale, tk_self, tk_cross,
):
    TQ, E = x_ref.shape
    S = E // heads
    Tz = kT_ca_ref.shape[-1]
    bf16, f32 = jnp.bfloat16, jnp.float32

    q0 = pl.program_id(1) * TQ          # global row offset of this query tile

    def split_heads_bf16(m):
        # (rows, E) bf16 -> (heads, rows, S) bf16; cast happens BEFORE the
        # stack so the head-split copy moves half the bytes.
        return jnp.stack([m[:, h * S:(h + 1) * S] for h in range(heads)], 0)

    def merge_heads(m):
        # (heads, rows, S) -> (rows, E)
        return jnp.concatenate([m[h] for h in range(heads)], axis=-1)

    def flash_attn(q_h, kT_ref, v_ref, tk, nk, causal):
        # Online-softmax attention over K blocks of width tk.  For the causal
        # case nk already excludes fully-masked K blocks.  q_h is pre-scaled.
        m_sc[...] = jnp.full(m_sc.shape, -jnp.inf, m_sc.dtype)
        l_sc[...] = jnp.zeros(l_sc.shape, l_sc.dtype)
        acc_sc[...] = jnp.zeros(acc_sc.shape, acc_sc.dtype)
        if causal:
            row = q0 + lax.broadcasted_iota(jnp.int32, (TQ, tk), 0)
            col0 = lax.broadcasted_iota(jnp.int32, (TQ, tk), 1)

        @pl.loop(0, nk)
        def _(kb):
            start = pl.multiple_of(kb * tk, tk)
            k_blk = kT_ref[:, :, pl.ds(start, tk)]             # (h, S, tk) bf16
            v_blk = v_ref[:, pl.ds(start, tk), :]              # (h, tk, S) bf16
            s = lax.dot_general(q_h, k_blk, (((2,), (1,)), ((0,), (0,))),
                                preferred_element_type=f32)    # (h, TQ, tk)
            if causal:
                s = jnp.where((start + col0 <= row)[None], s, -jnp.inf)
            m_prev = m_sc[...]
            m_new = jnp.maximum(m_prev, jnp.max(s, axis=-1, keepdims=True))
            alpha = jnp.exp(m_prev - m_new)
            p = jnp.exp(s - m_new)
            l_sc[...] = alpha * l_sc[...] + jnp.sum(p, axis=-1, keepdims=True)
            acc_sc[...] = alpha * acc_sc[...] + lax.dot_general(
                p.astype(bf16), v_blk, (((2,), (1,)), ((0,), (0,))),
                preferred_element_type=f32)
            m_sc[...] = m_new

        # normalize after PV accumulation; approx reciprocal rides the EUP slot
        return acc_sc[...] * pl.reciprocal(l_sc[...], approx=True)  # (h,TQ,S) f32

    def mha(q_in_bf16, wq_ref, kT_ref, v_ref, wu_ref, bu_ref, tk, nk, causal):
        q = jnp.dot(q_in_bf16, wq_ref[...], preferred_element_type=f32)
        # fold the softmax scale into q (VPU pass over (TQ,E), not (h,TQ,Tk))
        q_h = split_heads_bf16((q * scale).astype(bf16))
        o_h = flash_attn(q_h, kT_ref, v_ref, tk, nk, causal)
        out = merge_heads(o_h.astype(bf16))                    # (TQ, E) bf16
        return jnp.dot(out, wu_ref[...], preferred_element_type=f32) + bu_ref[...]

    x_t = x_ref[...]                                           # (TQ, E) f32
    x_t_bf16 = x_t.astype(bf16)

    # --- causal self-attention (skip K blocks beyond the causal frontier) ---
    nk_self = (q0 + TQ + tk_self - 1) // tk_self
    attended = mha(x_t_bf16, wq_s_ref, kT_sa_ref, v_sa_ref, wu_s_ref, bu_s_ref,
                   tk_self, nk_self, causal=True)
    x1 = _layernorm(attended + x_t, g1_ref[...], b1_ref[...])

    # --- cross-attention: queries are the PRE-norm self-attention output ----
    nk_cross = Tz // tk_cross
    catt = mha(attended.astype(bf16), wq_c_ref, kT_ca_ref, v_ca_ref,
               wu_c_ref, bu_c_ref, tk_cross, nk_cross, causal=False)
    x2 = _layernorm(catt + x1, g2_ref[...], b2_ref[...])

    # --- feed-forward --------------------------------------------------------
    # TODO(synk): for very large E on v7x, stream wff1/wff2 over the hidden dim
    # (emit_pipeline / extra grid axis) instead of keeping both resident.
    h1 = jnp.dot(x2.astype(bf16), wff1_ref[...], preferred_element_type=f32)
    h1 = jnp.maximum(h1 + bff1_ref[...], 0.0)
    ff = jnp.dot(h1.astype(bf16), wff2_ref[...], preferred_element_type=f32)
    ff = ff + bff2_ref[...]
    o_ref[...] = _layernorm(ff + x2, g3_ref[...], b3_ref[...])


# ---------------------------------------------------------------------------
# Wrapper (pallas_call plumbing)
# ---------------------------------------------------------------------------
def conditional_block_forward(x, z, p, *, heads, scale,
                              tq=None, tk_self=None, tk_cross=None):
    B, T, E = x.shape
    Bz, Tz, Ez = z.shape
    assert Bz == B and Ez == E and E % heads == 0
    S = E // heads
    if tq is None:
        tq = min(T, 256)
    if tk_self is None:
        tk_self = min(T, 512)
    if tk_cross is None:
        tk_cross = min(Tz, 512)
    assert T % tq == 0 and T % tk_self == 0 and Tz % tk_cross == 0
    # NOTE: for best MXU/store utilization pad T and Tz to multiples of 128
    # (256 on v6e/v7x) before calling; small demo shapes are handled correctly.

    # Generation-aware VMEM limit with headroom (v7x: 64 MiB physical).
    try:
        vmem_cap = pltpu.get_tpu_info().vmem_capacity_bytes
    except Exception:
        vmem_cap = 64 * 1024 * 1024
    vmem_limit = min((vmem_cap * 3) // 4, 100 * 1024 * 1024)

    # Stage 1: per-batch K/V projections (K pre-transposed, bf16).
    kT_sa, v_sa = _kv_project(x, p["wk_s"], p["wv_s"], heads=heads,
                              vmem_limit=vmem_limit)
    kT_ca, v_ca = _kv_project(z, p["wk_c"], p["wv_c"], heads=heads,
                              vmem_limit=vmem_limit)

    weights = (
        p["wq_s"], p["wu_s"], p["bu_s"],
        p["wq_c"], p["wu_c"], p["bu_c"],
        p["g1"], p["b1"], p["g2"], p["b2"], p["g3"], p["b3"],
        p["wff1"], p["bff1"], p["wff2"], p["bff2"],
    )
    kern = functools.partial(conditional_block_kernel, heads=heads, scale=scale,
                             tk_self=tk_self, tk_cross=tk_cross)

    def kv_spec(arr):
        return _single_buffered_spec((None,) + arr.shape[1:],
                                     lambda b, q: (b, 0, 0, 0))

    in_specs = [
        pl.BlockSpec((None, tq, E), lambda b, q: (b, q, 0)),     # x query tile
        kv_spec(kT_sa), kv_spec(v_sa), kv_spec(kT_ca), kv_spec(v_ca),
    ]
    # weights/biases: constant index map + single-buffered (fetched once).
    in_specs += [_single_buffered_spec(w.shape, lambda b, q: (0, 0))
                 for w in weights]

    return pl.pallas_call(
        kern,
        out_shape=jax.ShapeDtypeStruct((B, T, E), jnp.float32),
        grid=(B, T // tq),
        in_specs=in_specs,
        out_specs=pl.BlockSpec((None, tq, E), lambda b, q: (b, q, 0)),
        scratch_shapes=[
            pltpu.VMEM((heads, tq, 1), jnp.float32),   # running max
            pltpu.VMEM((heads, tq, 1), jnp.float32),   # running denom
            pltpu.VMEM((heads, tq, S), jnp.float32),   # PV accumulator
        ],
        compiler_params=pltpu.CompilerParams(
            # no cross-iteration scratch carry -> both axes core-shardable (v7x)
            dimension_semantics=("parallel", "parallel"),
            vmem_limit_bytes=vmem_limit,
        ),
    )(x, kT_sa, v_sa, kT_ca, v_ca, *weights)


# ---------------------------------------------------------------------------
# Deterministic parameter init (shapes follow ConditionalBlock.__init__)
# ---------------------------------------------------------------------------
def init_params(key, *, emb, ff_mult=4):
    E, Fh = emb, ff_mult * emb
    ks = jax.random.split(key, 20)

    def w(k, din, dout):
        return (jax.random.normal(k, (din, dout), jnp.float32) /
                math.sqrt(din)).astype(jnp.bfloat16)

    def b(k, d):
        return 0.01 * jax.random.normal(k, (1, d), jnp.float32)

    return {
        # self-attention (k/q/v bias-free, unifyheads with bias)
        "wq_s": w(ks[0], E, E), "wk_s": w(ks[1], E, E), "wv_s": w(ks[2], E, E),
        "wu_s": w(ks[3], E, E), "bu_s": b(ks[4], E),
        # cross-attention
        "wq_c": w(ks[5], E, E), "wk_c": w(ks[6], E, E), "wv_c": w(ks[7], E, E),
        "wu_c": w(ks[8], E, E), "bu_c": b(ks[9], E),
        # layer norms
        "g1": 1.0 + b(ks[10], E), "b1": b(ks[11], E),
        "g2": 1.0 + b(ks[12], E), "b2": b(ks[13], E),
        "g3": 1.0 + b(ks[14], E), "b3": b(ks[15], E),
        # feed-forward
        "wff1": w(ks[16], E, Fh), "bff1": b(ks[17], Fh),
        "wff2": w(ks[18], Fh, E), "bff2": b(ks[19], E),
    }


# ---------------------------------------------------------------------------
# Pure-JAX reference (same mixed-precision recipe; exact softmax division)
# ---------------------------------------------------------------------------
def _mm(a, w):
    return jnp.dot(a.astype(jnp.bfloat16), w.astype(jnp.bfloat16),
                   preferred_element_type=jnp.float32)


def _ref_attention(q_in, kv_in, wq, wk, wv, wu, bu, *, heads, scale, causal):
    B, Tq, E = q_in.shape
    Tk = kv_in.shape[1]
    S = E // heads
    q = _mm(q_in, wq).reshape(B, Tq, heads, S)
    k = _mm(kv_in, wk).reshape(B, Tk, heads, S)
    v = _mm(kv_in, wv).reshape(B, Tk, heads, S)
    sc = jnp.einsum("bqhs,bkhs->bhqk", q.astype(jnp.bfloat16),
                    k.astype(jnp.bfloat16),
                    preferred_element_type=jnp.float32) * scale
    if causal:
        mask = jnp.arange(Tk)[None, :] <= jnp.arange(Tq)[:, None]
        sc = jnp.where(mask[None, None], sc, -jnp.inf)
    p = jax.nn.softmax(sc, axis=-1)
    out = jnp.einsum("bhqk,bkhs->bqhs", p.astype(jnp.bfloat16),
                     v.astype(jnp.bfloat16),
                     preferred_element_type=jnp.float32).reshape(B, Tq, E)
    return _mm(out, wu) + bu


def reference_forward(x, z, p, *, heads, scale):
    attended = _ref_attention(x, x, p["wq_s"], p["wk_s"], p["wv_s"],
                              p["wu_s"], p["bu_s"], heads=heads, scale=scale,
                              causal=True)
    x1 = _layernorm(attended + x, p["g1"], p["b1"])
    catt = _ref_attention(attended, z, p["wq_c"], p["wk_c"], p["wv_c"],
                          p["wu_c"], p["bu_c"], heads=heads, scale=scale,
                          causal=False)
    x2 = _layernorm(catt + x1, p["g2"], p["b2"])
    h1 = jnp.maximum(_mm(x2, p["wff1"]) + p["bff1"], 0.0)
    ff = _mm(h1, p["wff2"]) + p["bff2"]
    return _layernorm(ff + x2, p["g3"], p["b3"])


# ---------------------------------------------------------------------------
if __name__ == "__main__":
    B, T, Tz = 2, 32, 16
    E, heads = 256, 2                 # head dim 128 -> lane-aligned
    scale = 1.0 / math.sqrt(E / heads)

    key = jax.random.PRNGKey(0)
    k_p, k_x, k_z = jax.random.split(key, 3)
    params = init_params(k_p, emb=E)
    x = jax.random.normal(k_x, (B, T, E), jnp.float32)
    z = jax.random.normal(k_z, (B, Tz, E), jnp.float32)

    out = conditional_block_forward(x, z, params, heads=heads, scale=scale,
                                    tq=16)
    out = jax.block_until_ready(out)

    ref = reference_forward(x, z, params, heads=heads, scale=scale)
    assert out.shape == (B, T, E)
    assert bool(jnp.all(jnp.isfinite(out)))
    assert bool(jnp.allclose(out, ref, atol=3e-2, rtol=3e-2)), \
        float(jnp.max(jnp.abs(out - ref)))

    print("KERNEL_OK")
</pallas_src>

<mosaic_0001>
module attributes {stable_mosaic.version = 11 : i64} {
  func.func @kv_project_kernel(%arg0: i32, %arg1: memref<1x32x256xf32, #tpu.memory_space<vmem>>, %arg2: memref<256x256xbf16, #tpu.memory_space<vmem>>, %arg3: memref<256x256xbf16, #tpu.memory_space<vmem>>, %arg4: memref<1x2x128x32xbf16, #tpu.memory_space<vmem>>, %arg5: memref<1x2x32x128xbf16, #tpu.memory_space<vmem>>) attributes {dimension_semantics = [#tpu.dimension_semantics<parallel>], iteration_bounds = array<i64: 2>, scalar_prefetch = 0 : i64, scratch_operands = 0 : i64, tpu.core_type = #tpu.core_type<tc>, window_params = [{transform_indices = @transform_0, window_bounds = array<i64: 1, 32, 256>}, {pipeline_mode = #tpu.pipeline_mode<synchronous>, transform_indices = @transform_1, window_bounds = array<i64: 256, 256>}, {pipeline_mode = #tpu.pipeline_mode<synchronous>, transform_indices = @transform_2, window_bounds = array<i64: 256, 256>}, {transform_indices = @transform_3, window_bounds = array<i64: 1, 2, 128, 32>}, {transform_indices = @transform_4, window_bounds = array<i64: 1, 2, 32, 128>}]} {
    %c0 = arith.constant 0 : index
    %c0_0 = arith.constant 0 : index
    %c0_1 = arith.constant 0 : index
    %0 = vector.load %arg1[%c0, %c0_0, %c0_1] : memref<1x32x256xf32, #tpu.memory_space<vmem>>, vector<1x32x256xf32>
    %1 = vector.shape_cast %0 : vector<1x32x256xf32> to vector<32x256xf32>
    %2 = arith.truncf %1 : vector<32x256xf32> to vector<32x256xbf16>
    %c0_2 = arith.constant 0 : index
    %c0_3 = arith.constant 0 : index
    %3 = vector.load %arg2[%c0_2, %c0_3] : memref<256x256xbf16, #tpu.memory_space<vmem>>, vector<256x256xbf16>
    %cst = arith.constant dense<0.000000e+00> : vector<32x256xf32>
    %4 = tpu.matmul %2, %3, %cst {dimension_numbers = #tpu.dot_dimension_numbers<[1], [0], [0], [1], [0, 0, 1, 1], [], []>} : vector<32x256xbf16>, vector<256x256xbf16>, vector<32x256xf32> -> vector<32x256xf32>
    %c0_4 = arith.constant 0 : index
    %c0_5 = arith.constant 0 : index
    %5 = vector.load %arg3[%c0_4, %c0_5] : memref<256x256xbf16, #tpu.memory_space<vmem>>, vector<256x256xbf16>
    %cst_6 = arith.constant dense<0.000000e+00> : vector<32x256xf32>
    %6 = tpu.matmul %2, %5, %cst_6 {dimension_numbers = #tpu.dot_dimension_numbers<[1], [0], [0], [1], [0, 0, 1, 1], [], []>} : vector<32x256xbf16>, vector<256x256xbf16>, vector<32x256xf32> -> vector<32x256xf32>
    %7 = vector.extract_strided_slice %4 {offsets = [0, 0], sizes = [32, 128], strides = [1, 1]} : vector<32x256xf32> to vector<32x128xf32>
    %8 = tpu.transpose %7, [1, 0] : vector<32x128xf32> -> vector<128x32xf32>
    %9 = arith.truncf %8 : vector<128x32xf32> to vector<128x32xbf16>
    %c0_7 = arith.constant 0 : index
    %c0_8 = arith.constant 0 : index
    %c0_9 = arith.constant 0 : index
    %c0_10 = arith.constant 0 : index
    %10 = vector.load %arg4[%c0_7, %c0_8, %c0_9, %c0_10] : memref<1x2x128x32xbf16, #tpu.memory_space<vmem>>, vector<1x1x128x32xbf16>
    %11 = vector.shape_cast %10 : vector<1x1x128x32xbf16> to vector<128x32xbf16>
    %12 = vector.shape_cast %9 : vector<128x32xbf16> to vector<1x1x128x32xbf16>
    tpu.vector_store %arg4[%c0_7, %c0_8, %c0_9, %c0_10], %12 {strides = array<i32>} : memref<1x2x128x32xbf16, #tpu.memory_space<vmem>>, vector<1x1x128x32xbf16>,
    %13 = vector.extract_strided_slice %6 {offsets = [0, 0], sizes = [32, 128], strides = [1, 1]} : vector<32x256xf32> to vector<32x128xf32>
    %14 = arith.truncf %13 : vector<32x128xf32> to vector<32x128xbf16>
    %c0_11 = arith.constant 0 : index
    %c0_12 = arith.constant 0 : index
    %c0_13 = arith.constant 0 : index
    %c0_14 = arith.constant 0 : index
    %15 = vector.load %arg5[%c0_11, %c0_12, %c0_13, %c0_14] : memref<1x2x32x128xbf16, #tpu.memory_space<vmem>>, vector<1x1x32x128xbf16>
    %16 = vector.shape_cast %15 : vector<1x1x32x128xbf16> to vector<32x128xbf16>
    %17 = vector.shape_cast %14 : vector<32x128xbf16> to vector<1x1x32x128xbf16>
    tpu.vector_store %arg5[%c0_11, %c0_12, %c0_13, %c0_14], %17 {strides = array<i32>} : memref<1x2x32x128xbf16, #tpu.memory_space<vmem>>, vector<1x1x32x128xbf16>,
    %18 = vector.extract_strided_slice %4 {offsets = [0, 128], sizes = [32, 128], strides = [1, 1]} : vector<32x256xf32> to vector<32x128xf32>
    %19 = tpu.transpose %18, [1, 0] : vector<32x128xf32> -> vector<128x32xf32>
    %20 = arith.truncf %19 : vector<128x32xf32> to vector<128x32xbf16>
    %c0_15 = arith.constant 0 : index
    %c1 = arith.constant 1 : index
    %c0_16 = arith.constant 0 : index
    %c0_17 = arith.constant 0 : index
    %21 = vector.load %arg4[%c0_15, %c1, %c0_16, %c0_17] : memref<1x2x128x32xbf16, #tpu.memory_space<vmem>>, vector<1x1x128x32xbf16>
    %22 = vector.shape_cast %21 : vector<1x1x128x32xbf16> to vector<128x32xbf16>
    %23 = vector.shape_cast %20 : vector<128x32xbf16> to vector<1x1x128x32xbf16>
    tpu.vector_store %arg4[%c0_15, %c1, %c0_16, %c0_17], %23 {strides = array<i32>} : memref<1x2x128x32xbf16, #tpu.memory_space<vmem>>, vector<1x1x128x32xbf16>,
    %24 = vector.extract_strided_slice %6 {offsets = [0, 128], sizes = [32, 128], strides = [1, 1]} : vector<32x256xf32> to vector<32x128xf32>
    %25 = arith.truncf %24 : vector<32x128xf32> to vector<32x128xbf16>
    %c0_18 = arith.constant 0 : index
    %c1_19 = arith.constant 1 : index
    %c0_20 = arith.constant 0 : index
    %c0_21 = arith.constant 0 : index
    %26 = vector.load %arg5[%c0_18, %c1_19, %c0_20, %c0_21] : memref<1x2x32x128xbf16, #tpu.memory_space<vmem>>, vector<1x1x32x128xbf16>
    %27 = vector.shape_cast %26 : vector<1x1x32x128xbf16> to vector<32x128xbf16>
    %28 = vector.shape_cast %25 : vector<32x128xbf16> to vector<1x1x32x128xbf16>
    tpu.vector_store %arg5[%c0_18, %c1_19, %c0_20, %c0_21], %28 {strides = array<i32>} : memref<1x2x32x128xbf16, #tpu.memory_space<vmem>>, vector<1x1x32x128xbf16>,
    return
  }
  func.func @transform_0(%arg0: i32) -> (i32, i32, i32) {
    %c0_i32 = arith.constant 0 : i32
    %c0_i32_0 = arith.constant 0 : i32
    %c0_i32_1 = arith.constant 0 : i32
    return %arg0, %c0_i32, %c0_i32_0 : i32, i32, i32
  }
  func.func @transform_1(%arg0: i32) -> (i32, i32) {
    %c0_i32 = arith.constant 0 : i32
    %c0_i32_0 = arith.constant 0 : i32
    %c0_i32_1 = arith.constant 0 : i32
    return %c0_i32, %c0_i32_0 : i32, i32
  }
  func.func @transform_2(%arg0: i32) -> (i32, i32) {
    %c0_i32 = arith.constant 0 : i32
    %c0_i32_0 = arith.constant 0 : i32
    %c0_i32_1 = arith.constant 0 : i32
    return %c0_i32, %c0_i32_0 : i32, i32
  }
  func.func @transform_3(%arg0: i32) -> (i32, i32, i32, i32) {
    %c0_i32 = arith.constant 0 : i32
    %c0_i32_0 = arith.constant 0 : i32
    %c0_i32_1 = arith.constant 0 : i32
    %c0_i32_2 = arith.constant 0 : i32
    return %arg0, %c0_i32, %c0_i32_0, %c0_i32_1 : i32, i32, i32, i32
  }
  func.func @transform_4(%arg0: i32) -> (i32, i32, i32, i32) {
    %c0_i32 = arith.constant 0 : i32
    %c0_i32_0 = arith.constant 0 : i32
    %c0_i32_1 = arith.constant 0 : i32
    %c0_i32_2 = arith.constant 0 : i32
    return %arg0, %c0_i32, %c0_i32_0, %c0_i32_1 : i32, i32, i32, i32
  }
}

</mosaic_0001>

<bundles_post_ra>
// kernel: tpu_custom_call.1
= control target key start
LH: loop header
LB: loop body
LE: loop exit
PB: predicated region body
PF: predicated region fallthrough
CT: control target
= control target key end

     0   :  { %10 = vsyncpa [#allocation3], 0  ;;  %s2143_s0 = inlined_call_operand.hbm [shape: f32[2,32,256], index: 0, kind: input, shape index: {}]   ;;  %s2144_s1 = inlined_call_operand.hbm [shape: bf16[256,256], index: 1, kind: input, shape index: {}]   ;;  %s2145_s2 = inlined_call_operand.hbm [shape: bf16[256,256], index: 2, kind: input, shape index: {}]   ;;  %s2146_s3 = inlined_call_operand.vmem [shape: bf16[2,2,128,32], index: 3, kind: output, shape index: {0}]   ;;  %s2147_s4 = inlined_call_operand.hbm [shape: bf16[2,2,32,128], index: 4, kind: output, shape index: {1}]  }
   0x1   :  { %12 = vsyncpa [#allocation3 + $0x1], 0 }
   0x2   :  { %13 = vsyncpa [#allocation6], 0 }
   0x3   :  { %14 = vsyncpa [#allocation4], 0 }
   0x4   :  { %16 = vsyncpa [#allocation4 + $0x1], 0  ;;  %s1827_s15 = smov 0   ;;  %s1829_s16 = smov 0  }
   0x5   :  { %s1831_s17 = smov 0   ;;  %s1833_s18 = smov 0  }
   0x6 LB: > { %s1848_s19 = sadd.s32 4294967295, %s1790_s18   ;;  %s1166_s20 = sadd.s32 4294967294, %s1790_s18   ;;  %s1790_s18 = sphi %s1833_s18, %s2167_s18   ;;  %s1786_s17 = sphi %s1831_s17, %s2166_s17   ;;  %s1782_s16 = sphi %s1829_s16, %s2165_s16   ;;  %s1778_s15 = sphi %s1827_s15, %s2164_s15  }
   0x7   : > { %p42_p0 = scmp.ne.s32.totalorder %s1782_s16, %s1778_s15  ;;  %p2148_p1 = scmp.eq.s32.totalorder %s1848_s19, 0 }
   0x8   : > { %p140_p3 = scmp.eq.s32.totalorder %s1166_s20, 1  ;;  %p1167_p5 = scmp.ge.s32.totalorder %s1790_s18, 1 }
   0x9   : > { %p1857_p4 = por %p2148_p1, %p42_p0  ;;  %p147_p7 = scmp.lt.s32.totalorder %s1790_s18, 3 }
   0xa   : > { %p1862_p6 = por %p140_p3, %p42_p0  ;;  %s1792_s24 = smov [#allocation5]  }
   0xb   : > { %s2151_s21 = scalar_select %p1857_p4, 1, 0 }
   0xc   : > { %s2152_s22 = scalar_select %p1862_p6, 1, 0 }
   0xd   : > { %p1867_p8 = pnand %p1167_p5, %p147_p7  ;;  %s159_s25 = sshll.u32 %s1792_s24, 4  ;;  %s1871_s25 = int_to_ptr.vmem [resolvable:$true] %s159_s25 }
   0xe   : > { %s1793_s27 = smov [#allocation7]   ;;  %s1634_s5 = scalar_lea.hbm %s2144_s1, 4096 }
   0xf   : > { %p1388_p9 = pneg %p1867_p8  ;;  %s172_s28 = sshll.u32 %s1793_s27, 4  ;;  %s1882_s28 = int_to_ptr.vmem [resolvable:$true] %s172_s28 }
  0x10   : > { %p1635_p12 = scmp.ne.s32.totalorder %s2144_s1, %s1634_s5  ;;  %p1641_p5 = scmp.lt.u32.totalorder %s1634_s5, %s2144_s1 }
  0x11   : > { %p1878_p11 = pnand %p1388_p9, %p2148_p1 }
  0x13   : > { %p1636_p13 = pneg %p1878_p11 }
  0x15   : > { %p1637_p0 = pnand %p1636_p13, %p1635_p12 }
  0x17   : > { %p1638_p3 = pneg %p1637_p0 }
  0x19   : > { %p1643_p7 = pnand %p1641_p5, %p1638_p3 }
  0x1b   : > { %1646 = shalt.err (!%p1643_p7)
}
  0x1c   : > { %s1647_s10 = scalar_lea.vmem %s1871_s25, 4096  ;;  %p1655_p2 = scmp.lt.s32.totalorder %s1871_s25, %s1871_s25 }
  0x1d   : > { %p1648_p9 = scmp.ne.s32.totalorder %s1871_s25, %s1647_s10  ;;  %p1656_p12 = scmp.lt.s32.totalorder %s1647_s10, %s1647_s10 }
  0x1f   : > { %p1650_p10 = pnand %p1648_p9, %p1636_p13  ;;  %p1657_p0 = por %p1656_p12, %p1655_p2 }
  0x21   : > { %p1651_p1 = pneg %p1650_p10 }
  0x23   : > { %p1658_p6 = pnand %p1657_p0, %p1651_p1 }
  0x25   : > { %1661 = shalt.err (!%p1658_p6)
}
  0x26   : > { %s1794_s11 = smov 128   ;;  %s1795_s12 = smov 8  }
  0x27   : > { %1391 = dma.hbm_to_vmem [thread:$0]  (!%p1878_p11), %s2144_s1, 4096, %s1871_s25, [#allocation6], %s1794_s11, %s1794_s11, %s1795_s12  }
  0x28   : > { %s1662_s27 = scalar_lea.hbm %s2145_s2, 4096 }
  0x29   : > { %p1663_p2 = scmp.ne.s32.totalorder %s2145_s2, %s1662_s27  ;;  %p1669_p10 = scmp.lt.u32.totalorder %s1662_s27, %s2145_s2 }
  0x2b   : > { %p1665_p1 = pnand %p1663_p2, %p1636_p13 }
  0x2d   : > { %p1666_p6 = pneg %p1665_p1 }
  0x2f   : > { %p1671_p3 = pnand %p1669_p10, %p1666_p6 }
  0x31   : > { %1674 = shalt.err (!%p1671_p3)
}
  0x32   : > { %s1675_s25 = scalar_lea.vmem %s1882_s28, 4096  ;;  %p1683_p12 = scmp.lt.s32.totalorder %s1882_s28, %s1882_s28 }
  0x33   : > { %p1676_p5 = scmp.ne.s32.totalorder %s1882_s28, %s1675_s25  ;;  %p1684_p0 = scmp.lt.s32.totalorder %s1675_s25, %s1675_s25 }
  0x35   : > { %p1678_p7 = pnand %p1676_p5, %p1636_p13  ;;  %p1685_p2 = por %p1684_p0, %p1683_p12 }
  0x37   : > { %p1679_p9 = pneg %p1678_p7 }
  0x39   : > { %p1686_p1 = pnand %p1685_p2, %p1679_p9 }
  0x3b   : > { %1689 = shalt.err (!%p1686_p1)
}
  0x3c   : > { %1394 = dma.hbm_to_vmem [thread:$0]  (!%p1878_p11), %s2145_s2, 4096, %s1882_s28, [#allocation6], %s1794_s11, %s1794_s11, %s1795_s12  }
  0x3d   : > { %s1937_s9 = sadd.s32 1, %s1790_s18   ;;  %s29_s26 = sadd.s32 1, %s1786_s17 }
  0x3e   : > { %s26_s10 = ssub.s32 %s1790_s18, %s1937_s9  ;;  %p36_p13 = scmp.ne.s32.totalorder %s1786_s17, %s1782_s16 }
  0x3f   : > { %p27_p6 = scmp.eq.s32.totalorder %s26_s10, 0  ;;  %p37_p10 = scmp.eq.s32.totalorder %s1790_s18, 0 }
  0x40   : > { %p2155_p3 = scmp.eq.s32.totalorder %s1848_s19, 1  ;;  %p1405_p7 = scmp.lt.s32.totalorder %s1790_s18, 2 }
  0x41   : > { %s1953_s14 = scalar_select %p27_p6, %s1786_s17, %s29_s26  }
  0x42   : > { %p1947_p5 = por %p2155_p3, %p36_p13  ;;  %p38_p9 = por %p37_p10, %p36_p13 }
  0x43   : > { %s186_s20 = sand.u32 1, %s1786_s17   ;;  %s1310_s28 = sshll.u32 %s1790_s18, 10 }
  0x44   : > { %s2156_s13 = scalar_select %p1947_p5, 1, 0 }
  0x45   : > { %s1171_s24 = sshll.u32 %s186_s20, 6  ;;  %s1960_s27 = scalar_lea.hbm %s2143_s0, %s1310_s28 }
  0x46   : > { %s190_s29 = scalar_lea.vmem [#allocation2], %s1171_s24  ;;  %p1964_p11 = pnand %p1405_p7, %p38_p9 }
  0x47   : > { %s197_s30 = sshll.u32 %s190_s29, 4  ;;  %s1968_s6 = scalar_lea.sflag [#allocation3], %s186_s20  ;;  %s1962_s30 = int_to_ptr.vmem [resolvable:$true] %s197_s30 }
  0x48   : > { %s1690_s25 = scalar_lea.hbm %s1960_s27, 1024  ;;  %p1692_p0 = pneg %p1964_p11 }
  0x49   : > { %p1691_p12 = scmp.ne.s32.totalorder %s1960_s27, %s1690_s25  ;;  %s1695_s26 = scalar_lea.hbm %s2143_s0, 2048 }
  0x4a   : > { %p1696_p13 = scmp.lt.u32.totalorder %s1960_s27, %s2143_s0  ;;  %p1697_p6 = scmp.lt.u32.totalorder %s1695_s26, %s1690_s25 }
  0x4b   : > { %p1693_p2 = pnand %p1692_p0, %p1691_p12  ;;  %p1699_p3 = scmp.lt.u32.totalorder %s1690_s25, %s1960_s27 }
  0x4c   : > { %p1698_p10 = por %p1697_p6, %p1696_p13 }
  0x4d   : > { %p1694_p1 = pneg %p1693_p2 }
  0x4e   : > { %p1700_p7 = por %p1699_p3, %p1698_p10 }
  0x50   : > { %p1701_p9 = pnand %p1700_p7, %p1694_p1 }
  0x52   : > { %1704 = shalt.err (!%p1701_p9)
}
  0x53   : > { %s1705_s20 = scalar_lea.vmem %s1962_s30, 1024  ;;  %s1796_s28 = smov [#allocation2]  }
  0x54   : > { %p1706_p12 = scmp.ne.s32.totalorder %s1962_s30, %s1705_s20  ;;  %s1710_s11 = sshll.u32 %s1796_s28, 4  ;;  %s1711_s11 = int_to_ptr.vmem [resolvable:$false] %s1710_s11 }
  0x55   : > { %s1712_s12 = scalar_lea.vmem %s1711_s11, 2048  ;;  %p1713_p4 = scmp.lt.s32.totalorder %s1962_s30, %s1711_s11 }
  0x56   : > { %p1708_p2 = pnand %p1706_p12, %p1692_p0  ;;  %p1714_p13 = scmp.lt.s32.totalorder %s1712_s12, %s1705_s20 }
  0x58   : > { %p1709_p5 = pneg %p1708_p2  ;;  %p1715_p6 = por %p1714_p13, %p1713_p4 }
  0x5a   : > { %p1716_p10 = pnand %p1715_p6, %p1709_p5 }
  0x5c   : > { %1719 = shalt.err (!%p1716_p10)
}
  0x5d   : > { %s1797_s29 = smov 256   ;;  %s1798_s25 = smov 16  }
  0x5e   : > { %1398 = dma.hbm_to_vmem [thread:$0]  (!%p1964_p11), %s1960_s27, 1024, %s1962_s30, %s1968_s6, %s1797_s29, %s1797_s29, %s1798_s25  }
  0x5f   : > { %209 = sbr.rel (%p1867_p8) target bundleno = 580 (0x244), region = 32  ;;  %s1999_s7 = sand.u32 (!%p1867_p8), 1, %s1782_s16  }
  0x60   : > { %s1175_s8 = sshll.u32 (!%p1867_p8), %s1999_s7, 6  ;;  %s212_s26 = scalar_lea.sflag (!%p1867_p8), [#allocation3], %s1999_s7 }
  0x61   : > { %s2003_s10 = scalar_lea.vmem (!%p1867_p8), [#allocation2], %s1175_s8  ;;  %p2158_p4 = scmp.ne.s32.totalorder (!%p1867_p8), %s2151_s21, 0 }
  0x66   : > { %1765 = dma.done.wait (%p2158_p4), %s212_s26, 1024  }
  0x67   : > { %1767 = vsyncadd (%p2158_p4), %s212_s26, 4294966272  ;;  %p2159_p5 = scmp.eq.s32.totalorder %s1848_s19, 0 }
  0x69   : > { %1769 = dma.done.wait (%p2159_p5), [#allocation6], 8192   ;;  %p2160_p8 = pmov %p2159_p5 }
  0x6a   : > { %v1538_v0 = vld [vmem:[#allocation5 + $0x4] ss:$8 sps:$4 sm:$0xff]   ;;  %v1540_v1 = vld [vmem:[#allocation5] ss:$8 sps:$4 sm:$0xff]   ;;  %v1541_v2 = vld [vmem:[#allocation5 + $0x14] ss:$8 sps:$4 sm:$0xff]  }
  0x6b   : > { %1771 = vsyncadd (%p2160_p8), [#allocation6], 4294959104  ;;  %462 = vmatprep.subr.bf16.mxu0 %v1538_v0  ;;  %v1543_v3 = vld [vmem:[#allocation5 + $0x10] ss:$8 sps:$4 sm:$0xff]   ;;  %v1544_v4 = vld [vmem:[#allocation5 + $0x24] ss:$8 sps:$4 sm:$0xff]  }
  0x6c   : > { %463 = vmatpush1.bf16.msra.mxu0 %v1540_v1  ;;  %v1546_v5 = vld [vmem:[#allocation5 + $0x20] ss:$8 sps:$4 sm:$0xff]   ;;  %v1547_v6 = vld [vmem:[#allocation5 + $0x34] ss:$8 sps:$4 sm:$0xff]   ;;  %v1549_v7 = vld [vmem:[#allocation5 + $0x30] ss:$8 sps:$4 sm:$0xff]  }
  0x6d   : > { %464 = vmatprep.subr.bf16.mxu0 %v1541_v2  ;;  %v1550_v8 = vld [vmem:[#allocation5 + $0x44] ss:$8 sps:$4 sm:$0xff]   ;;  %v1552_v9 = vld [vmem:[#allocation5 + $0x40] ss:$8 sps:$4 sm:$0xff]   ;;  %v1553_v10 = vld [vmem:[#allocation5 + $0x54] ss:$8 sps:$4 sm:$0xff]  }
  0x6e   : > { %v1555_v11 = vld [vmem:[#allocation5 + $0x50] ss:$8 sps:$4 sm:$0xff]   ;;  %v1556_v12 = vld [vmem:[#allocation5 + $0x64] ss:$8 sps:$4 sm:$0xff]   ;;  %v1558_v16 = vld [vmem:[#allocation5 + $0x60] ss:$8 sps:$4 sm:$0xff]  }
  0x6f   : > { %v259_v13 = vld [vmem:[%s2003_s10 + $0x8] sm:$0xff]  ;;  %v261_v14 = vld [vmem:[%s2003_s10 + $0x18] sm:$0xff]  ;;  %v258_v54 = vld [vmem:[%s2003_s10] sm:$0xff]  ;;  %s1178_s21 = sshll.u32 %s1999_s7, 5  ;;  %s1352_s30 = sshll.u32 %s1848_s19, 9 }
  0x70   : > { %465 = vmatpush1.bf16.msra.mxu0 %v1543_v3  ;;  %v267_v15 = vpack.c.bf16 %v261_v14, %v259_v13  ;;  %v1559_v17 = vld [vmem:[#allocation5 + $0x74] ss:$8 sps:$4 sm:$0xff]   ;;  %v1586_v18 = vld [vmem:[#allocation7 + $0x4] ss:$8 sps:$4 sm:$0xff]   ;;  %v1588_v19 = vld [vmem:[#allocation7] ss:$8 sps:$4 sm:$0xff]   ;;  %s2028_s24 = scalar_lea.hbm %s2147_s4, %s1352_s30 }
  0x71   : > { %466 = vmatprep.subr.bf16.mxu0 %v1544_v4  ;;  %v1561_v20 = vld [vmem:[#allocation5 + $0x70] ss:$8 sps:$4 sm:$0xff]   ;;  %707 = vmatprep.subr.bf16.mxu1 %v1586_v18  ;;  %v1589_v21 = vld [vmem:[#allocation7 + $0x14] ss:$8 sps:$4 sm:$0xff]   ;;  %v1562_v22 = vld [vmem:[#allocation5 + $0x84] ss:$8 sps:$4 sm:$0xff]  }
  0x72   : > { %494 = vmatprep.mubr.bf16.mxu0 %v267_v15  ;;  %739 = vmatprep.mubr.bf16.mxu1 %v267_v15  ;;  %v1591_v23 = vld [vmem:[#allocation7 + $0x10] ss:$8 sps:$4 sm:$0xff]   ;;  %v1592_v24 = vld [vmem:[#allocation7 + $0x24] ss:$8 sps:$4 sm:$0xff]   ;;  %v1564_v25 = vld [vmem:[#allocation5 + $0x80] ss:$8 sps:$4 sm:$0xff]  }
  0x73   : > { %708 = vmatpush1.bf16.msra.mxu1 %v1588_v19  ;;  %v1565_v26 = vld [vmem:[#allocation5 + $0x94] ss:$8 sps:$4 sm:$0xff]   ;;  %v1594_v27 = vld [vmem:[#allocation7 + $0x20] ss:$8 sps:$4 sm:$0xff]   ;;  %v1567_v29 = vld [vmem:[#allocation5 + $0x90] ss:$8 sps:$4 sm:$0xff]  }
  0x74   : > { %467 = vmatpush1.bf16.msra.mxu0 %v1546_v5  ;;  %709 = vmatprep.subr.bf16.mxu1 %v1589_v21  ;;  %v1595_v28 = vld [vmem:[#allocation7 + $0x34] ss:$8 sps:$4 sm:$0xff]   ;;  %v1568_v30 = vld [vmem:[#allocation5 + $0xa4] ss:$8 sps:$4 sm:$0xff]   ;;  %v1597_v31 = vld [vmem:[#allocation7 + $0x30] ss:$8 sps:$4 sm:$0xff]  }
  0x75   : > { %468 = vmatprep.subr.bf16.mxu0 %v1547_v6  ;;  %v1598_v32 = vld [vmem:[#allocation7 + $0x44] ss:$8 sps:$4 sm:$0xff]   ;;  %v1570_v33 = vld [vmem:[#allocation5 + $0xa0] ss:$8 sps:$4 sm:$0xff]   ;;  %v1571_v34 = vld [vmem:[#allocation5 + $0xb4] ss:$8 sps:$4 sm:$0xff]  }
  0x76   : > { %v1600_v35 = vld [vmem:[#allocation7 + $0x40] ss:$8 sps:$4 sm:$0xff]   ;;  %v1601_v36 = vld [vmem:[#allocation7 + $0x54] ss:$8 sps:$4 sm:$0xff]   ;;  %v1573_v37 = vld [vmem:[#allocation5 + $0xb0] ss:$8 sps:$4 sm:$0xff]  }
  0x77   : > { %710 = vmatpush1.bf16.msra.mxu1 %v1591_v23  ;;  %v1574_v38 = vld [vmem:[#allocation5 + $0xc4] ss:$8 sps:$4 sm:$0xff]   ;;  %v1603_v39 = vld [vmem:[#allocation7 + $0x50] ss:$8 sps:$4 sm:$0xff]   ;;  %v1576_v41 = vld [vmem:[#allocation5 + $0xc0] ss:$8 sps:$4 sm:$0xff]  }
  0x78   : > { %469 = vmatpush1.bf16.msra.mxu0 %v1549_v7  ;;  %711 = vmatprep.subr.bf16.mxu1 %v1592_v24  ;;  %v1604_v40 = vld [vmem:[#allocation7 + $0x64] ss:$8 sps:$4 sm:$0xff]   ;;  %v1606_v42 = vld [vmem:[#allocation7 + $0x60] ss:$8 sps:$4 sm:$0xff]   ;;  %v1577_v43 = vld [vmem:[#allocation5 + $0xd4] ss:$8 sps:$4 sm:$0xff]  }
  0x79   : > { %470 = vmatprep.subr.bf16.mxu0 %v1550_v8  ;;  %v1607_v44 = vld [vmem:[#allocation7 + $0x74] ss:$8 sps:$4 sm:$0xff]   ;;  %v1579_v45 = vld [vmem:[#allocation5 + $0xd0] ss:$8 sps:$4 sm:$0xff]   ;;  %v1580_v47 = vld [vmem:[#allocation5 + $0xe4] ss:$8 sps:$4 sm:$0xff]  }
  0x7a   : > { %v1609_v46 = vld [vmem:[#allocation7 + $0x70] ss:$8 sps:$4 sm:$0xff]   ;;  %v1610_v48 = vld [vmem:[#allocation7 + $0x84] ss:$8 sps:$4 sm:$0xff]   ;;  %v1582_v49 = vld [vmem:[#allocation5 + $0xe0] ss:$8 sps:$4 sm:$0xff]  }
  0x7b   : > { %712 = vmatpush1.bf16.msra.mxu1 %v1594_v27  ;;  %v1612_v50 = vld [vmem:[#allocation7 + $0x80] ss:$8 sps:$4 sm:$0xff]   ;;  %v1583_v51 = vld [vmem:[#allocation5 + $0xf4] ss:$8 sps:$4 sm:$0xff]   ;;  %v1585_v53 = vld [vmem:[#allocation5 + $0xf0] ss:$8 sps:$4 sm:$0xff]  }
  0x7c   : > { %471 = vmatpush1.bf16.msra.mxu0 %v1552_v9  ;;  %713 = vmatprep.subr.bf16.mxu1 %v1595_v28  ;;  %v1613_v52 = vld [vmem:[#allocation7 + $0x94] ss:$8 sps:$4 sm:$0xff]   ;;  %v1615_v56 = vld [vmem:[#allocation7 + $0x90] ss:$8 sps:$4 sm:$0xff]   ;;  %v263_v57 = vld [vmem:[%s2003_s10 + $0x28] sm:$0xff]  ;;  %s252_s23 = scalar_lea.vmem [#allocation8], %s1178_s21 }
  0x7d   : > { %472 = vmatprep.subr.bf16.mxu0 %v1553_v10  ;;  %v260_v55 = vld [vmem:[%s2003_s10 + $0x10] sm:$0xff]  ;;  %v265_v58 = vld [vmem:[%s2003_s10 + $0x38] sm:$0xff]  ;;  %v1616_v59 = vld [vmem:[#allocation7 + $0xa4] ss:$8 sps:$4 sm:$0xff]   ;;  %s1049_s27 = sshll.u32 %s252_s23, 4  ;;  %s1033_s20 = scalar_lea.sflag [#allocation4], %s1999_s7  ;;  %s2022_s27 = int_to_ptr.vmem [resolvable:$true] %s1049_s27 }
  0x7e   : > { %v266_v60 = vpack.c.bf16 %v260_v55, %v258_v54  ;;  %v269_v61 = vpack.c.bf16 %v265_v58, %v263_v57  ;;  %v1618_v62 = vld [vmem:[#allocation7 + $0xa0] ss:$8 sps:$4 sm:$0xff]   ;;  %v1619_v63 = vld [vmem:[#allocation7 + $0xb4] ss:$8 sps:$4 sm:$0xff]   ;;  %v1621_v2 = vld [vmem:[#allocation7 + $0xb0] ss:$8 sps:$4 sm:$0xff]  }
  0x7f   : > { %714 = vmatpush1.bf16.msra.mxu1 %v1597_v31  ;;  %v262_v0 = vld [vmem:[%s2003_s10 + $0x20] sm:$0xff]  ;;  %v264_v1 = vld [vmem:[%s2003_s10 + $0x30] sm:$0xff]  ;;  %s1720_s28 = scalar_lea.vmem %s2022_s27, 512  ;;  %p2161_p0 = scmp.ne.s32.totalorder %s2156_s13, 0 }
  0x80   : > { %473 = vmatpush1.bf16.msra.mxu0 %v1555_v11  ;;  %715 = vmatprep.subr.bf16.mxu1 %v1598_v32  ;;  %v1622_v3 = vld [vmem:[#allocation7 + $0xc4] ss:$8 sps:$4 sm:$0xff]   ;;  %v268_v4 = vpack.c.bf16 %v264_v1, %v262_v0  ;;  %v1624_v5 = vld [vmem:[#allocation7 + $0xc0] ss:$8 sps:$4 sm:$0xff]   ;;  %v1625_v6 = vld [vmem:[#allocation7 + $0xd4] ss:$8 sps:$4 sm:$0xff]   ;;  %p1721_p11 = scmp.ne.s32.totalorder %s2022_s27, %s1720_s28 }
  0x81   : > { %474 = vmatprep.subr.bf16.mxu0 %v1556_v12  ;;  %v1627_v7 = vld [vmem:[#allocation7 + $0xd0] ss:$8 sps:$4 sm:$0xff]   ;;  %v1628_v8 = vld [vmem:[#allocation7 + $0xe4] ss:$8 sps:$4 sm:$0xff]   ;;  %v1630_v9 = vld [vmem:[#allocation7 + $0xe0] ss:$8 sps:$4 sm:$0xff]  }
  0x82   : > { %v1631_v10 = vld [vmem:[#allocation7 + $0xf4] ss:$8 sps:$4 sm:$0xff]   ;;  %v1633_v11 = vld [vmem:[#allocation7 + $0xf0] ss:$8 sps:$4 sm:$0xff]   ;;  %p1722_p1 = pnand %p1721_p11, %p2161_p0  ;;  %s1799_s11 = smov [#allocation8]  }
  0x83   : > { %716 = vmatpush1.bf16.msra.mxu1 %v1600_v35  ;;  %s1724_s12 = sshll.u32 %s1799_s11, 4  ;;  %s1725_s12 = int_to_ptr.vmem [resolvable:$false] %s1724_s12 }
  0x84   : > { %475 = vmatpush1.bf16.msra.mxu0 %v1558_v16  ;;  %717 = vmatprep.subr.bf16.mxu1 %v1601_v36  ;;  %p1723_p3 = pneg %p1722_p1  ;;  %s1726_s29 = scalar_lea.vmem %s1725_s12, 1024 }
  0x85   : > { %476 = vmatprep.subr.bf16.mxu0 %v1559_v17  ;;  %p1727_p7 = scmp.lt.s32.totalorder %s2022_s27, %s1725_s12  ;;  %p1728_p9 = scmp.lt.s32.totalorder %s1726_s29, %s1720_s28 }
  0x87   : > { %718 = vmatpush1.bf16.msra.mxu1 %v1603_v39  ;;  %p1729_p12 = por %p1728_p9, %p1727_p7 }
  0x88   : > { %477 = vmatpush1.bf16.msra.mxu0 %v1561_v20  ;;  %719 = vmatprep.subr.bf16.mxu1 %v1604_v40 }
  0x89   : > { %478 = vmatprep.subr.bf16.mxu0 %v1562_v22  ;;  %p1730_p2 = pnand %p1729_p12, %p1723_p3 }
  0x8b   : > { %720 = vmatpush1.bf16.msra.mxu1 %v1606_v42 }
  0x8c   : > { %479 = vmatpush1.bf16.msra.mxu0 %v1564_v25  ;;  %721 = vmatprep.subr.bf16.mxu1 %v1607_v44 }
  0x8d   : > { %480 = vmatprep.subr.bf16.mxu0 %v1565_v26 }
  0x8f   : > { %722 = vmatpush1.bf16.msra.mxu1 %v1609_v46 }
  0x90   : > { %481 = vmatpush1.bf16.msra.mxu0 %v1567_v29  ;;  %723 = vmatprep.subr.bf16.mxu1 %v1610_v48 }
  0x91   : > { %482 = vmatprep.subr.bf16.mxu0 %v1568_v30 }
  0x93   : > { %724 = vmatpush1.bf16.msra.mxu1 %v1612_v50 }
  0x94   : > { %483 = vmatpush1.bf16.msra.mxu0 %v1570_v33  ;;  %725 = vmatprep.subr.bf16.mxu1 %v1613_v52 }
  0x95   : > { %484 = vmatprep.subr.bf16.mxu0 %v1571_v34 }
  0x97   : > { %726 = vmatpush1.bf16.msra.mxu1 %v1615_v56 }
  0x98   : > { %485 = vmatpush1.bf16.msra.mxu0 %v1573_v37  ;;  %727 = vmatprep.subr.bf16.mxu1 %v1616_v59 }
  0x99   : > { %486 = vmatprep.subr.bf16.mxu0 %v1574_v38 }
  0x9b   : > { %728 = vmatpush1.bf16.msra.mxu1 %v1618_v62 }
  0x9c   : > { %487 = vmatpush1.bf16.msra.mxu0 %v1576_v41  ;;  %729 = vmatprep.subr.bf16.mxu1 %v1619_v63 }
  0x9d   : > { %488 = vmatprep.subr.bf16.mxu0 %v1577_v43 }
  0x9f   : > { %730 = vmatpush1.bf16.msra.mxu1 %v1621_v2 }
  0xa0   : > { %489 = vmatpush1.bf16.msra.mxu0 %v1579_v45  ;;  %731 = vmatprep.subr.bf16.mxu1 %v1622_v3 }
  0xa1   : > { %490 = vmatprep.subr.bf16.mxu0 %v1580_v47 }
  0xa3   : > { %732 = vmatpush1.bf16.msra.mxu1 %v1624_v5 }
  0xa4   : > { %491 = vmatpush1.bf16.msra.mxu0 %v1582_v49  ;;  %733 = vmatprep.subr.bf16.mxu1 %v1625_v6 }
  0xa5   : > { %492 = vmatprep.subr.bf16.mxu0 %v1583_v51 }
  0xa7   : > { %734 = vmatpush1.bf16.msra.mxu1 %v1627_v7 }
  0xa8   : > { %493 = vmatpush1.bf16.msra.mxu0 %v1585_v53  ;;  %735 = vmatprep.subr.bf16.mxu1 %v1628_v8 }
  0xab   : > { %495 = vmatmul.mubr.bf16.vlgmr.msra.gmra.mrb[0].mxu0 %v266_v60  ;;  %736 = vmatpush1.bf16.msra.mxu1 %v1630_v9 }
  0xac   : > { %504 = vmatprep.mubr.bf16.mxu0 %v269_v61  ;;  %737 = vmatprep.subr.bf16.mxu1 %v1631_v10 }
  0xaf   : > { %738 = vmatpush1.bf16.msra.mxu1 %v1633_v11 }
  0xb2   : > { %740 = vmatmul.mubr.bf16.vlgmr.msra.gmra.mrb[0].mxu1 %v266_v60 }
  0xb3   : > { %505 = vmatmul.mubr.bf16.gmra.mrb[4].mxu0 %v268_v4  ;;  %749 = vmatprep.mubr.bf16.mxu1 %v269_v61 }
  0xba   : > { %750 = vmatmul.mubr.bf16.gmra.mrb[4].mxu1 %v268_v4 }
 0x17e   : > { %v496_v12 = vpop.f32.mrb[0].mxu0 }
 0x17f   : > { %v498_v13 = vpop.f32.mrb[1].mxu0 }
 0x180   : > { %v500_v14 = vpop.f32.mrb[2].mxu0  ;;  %v1450_v15 = vpack.i.bf16 %v498_v13, %v496_v12 }
 0x181   : > { %v502_v16 = vpop.f32.mrb[3].mxu0 }
 0x182   : > { %v1452_v17 = vpack.i.bf16 %v502_v16, %v500_v14  ;;  %1451 = vxpose.xlu0.b32.start [1/4] (short) %v1450_v15, 128 }
 0x185   : > { %v741_v24 = vpop.f32.mrb[0].mxu1 }
 0x186   : > { %1453 = vxpose.xlu0.b32.cont [2/4] (short) %v1452_v17, 128  ;;  %v506_v18 = vpop.f32.mrb[4].mxu0  ;;  %v743_v25 = vpop.f32.mrb[1].mxu1 }
 0x187   : > { %v508_v19 = vpop.f32.mrb[5].mxu0  ;;  %v745_v26 = vpop.f32.mrb[2].mxu1 }
 0x188   : > { %v1454_v20 = vpack.i.bf16 %v508_v19, %v506_v18  ;;  %v510_v21 = vpop.f32.mrb[6].mxu0  ;;  %v747_v27 = vpop.f32.mrb[3].mxu1  ;;  %v1356_v28 = vpack.c.bf16 %v745_v26, %v741_v24 }
 0x189   : > { %v512_v22 = vpop.f32.mrb[7].mxu0  ;;  %v1366_v29 = vpack.c.bf16 %v747_v27, %v743_v25 }
 0x18a   : > { %v1456_v23 = vpack.i.bf16 %v512_v22, %v510_v21  ;;  %1455 = vxpose.xlu0.b32.cont [3/4] (short) %v1454_v20, 128  ;;  %1357 = vst [vmem:[%s252_s23] sm:$0xff] %v1356_v28  }
 0x18b   : > { %1374 = vst [vmem:[%s252_s23 + $0x10] sm:$0xff] %v1366_v29  }
 0x18d   : > { %v751_v30 = vpop.f32.mrb[4].mxu1 }
 0x18e   : > { %1457 = vxpose.xlu0.b32.end [4/4] (short) %v1456_v23, 128  ;;  %v753_v31 = vpop.f32.mrb[5].mxu1 }
 0x18f   : > { %v755_v32 = vpop.f32.mrb[6].mxu1 }
 0x190   : > { %v757_v33 = vpop.f32.mrb[7].mxu1  ;;  %v1361_v34 = vpack.c.bf16 %v755_v32, %v751_v30 }
 0x191   : > { %v1371_v35 = vpack.c.bf16 %v757_v33, %v753_v31 }
 0x192   : > { %1373 = vst [vmem:[%s252_s23 + $0x8] sm:$0xff] %v1361_v34  }
 0x193   : > { %1375 = vst [vmem:[%s252_s23 + $0x18] sm:$0xff] %v1371_v35  }
 0x194   : > { %1733 = shalt.err (!%p1730_p2)
}
 0x195   : > { %s1734_s25 = scalar_lea.hbm %s2028_s24, 512  ;;  %s1738_s10 = scalar_lea.hbm %s2147_s4, 1024 }
 0x196   : > { %p1735_p13 = scmp.ne.s32.totalorder %s2028_s24, %s1734_s25  ;;  %p1739_p4 = scmp.lt.u32.totalorder %s2028_s24, %s2147_s4 }
 0x197   : > { %p1740_p5 = scmp.lt.u32.totalorder %s1738_s10, %s1734_s25  ;;  %p1742_p11 = scmp.lt.u32.totalorder %s1734_s25, %s2028_s24 }
 0x198   : > { %p1736_p6 = pnand %p1735_p13, %p2161_p0 }
 0x199   : > { %p1741_p8 = por %p1740_p5, %p1739_p4 }
 0x19a   : > { %p1737_p10 = pneg %p1736_p6 }
 0x19b   : > { %p1743_p1 = por %p1742_p11, %p1741_p8 }
 0x19d   : > { %p1744_p3 = pnand %p1743_p1, %p1737_p10 }
 0x19f   : > { %1747 = shalt.err (!%p1744_p3)
}
 0x1a0   : > { %s1800_s30 = smov 64   ;;  %s1801_s5 = smov 4   ;;  %vm856_vm0 = vcmask 257024  }
 0x1a1   : > { %1386 = dma.vmem_to_hbm [thread:$0]  (%p2161_p0), %s2022_s27, 512, %s2028_s24, %s1033_s20, %s1800_s30, %s1800_s30, %s1801_s5  }
 0x1a2   : > { %p253_p7 = scmp.lt.s32.totalorder %s1848_s19, 1 }
 0x1a4   : > { %s2169_s19 = smov (!%p253_p7, %s1848_s19), 1 }
 0x1a5   : > { %s1311_s6 = sshll.u32 %s2169_s19, 7 }
 0x1a6   : > { %s2059_s12 = scalar_lea.vmem %s2146_s3, %s1311_s6 }
 0x202   : > { %v1458_v36 = vpop.trf.xlu0 }
 0x203   : > { %v1462_v37 = vunpack.i.h.bf16 %v1458_v36  ;;  %v1459_v38 = vunpack.i.l.bf16 %v1458_v36 }
 0x205   : > { %v1332_v39 = vpack.c.bf16 %v1462_v37, %v1462_v37  ;;  %v1312_v40 = vpack.c.bf16 %v1459_v38, %v1459_v38 }
 0x206   : > { %v1463_v41 = vpop.trf.xlu0 }
 0x207   : > { %1281 = vst.msk [vmem:[%s2059_s12 + $0x40] sm:$0xf] %vm856_vm0, %v1332_v39  ;;  %857 = vst.msk [vmem:[%s2059_s12] sm:$0xf] %vm856_vm0, %v1312_v40  ;;  %v1467_v42 = vunpack.i.h.bf16 %v1463_v41  ;;  %v1464_v43 = vunpack.i.l.bf16 %v1463_v41 }
 0x209   : > { %v1333_v44 = vpack.c.bf16 %v1467_v42, %v1467_v42  ;;  %v1313_v45 = vpack.c.bf16 %v1464_v43, %v1464_v43 }
 0x20a   : > { %v1468_v46 = vpop.trf.xlu0 }
 0x20b   : > { %1282 = vst.msk [vmem:[%s2059_s12 + $0x44] sm:$0xf] %vm856_vm0, %v1333_v44  ;;  %858 = vst.msk [vmem:[%s2059_s12 + $0x4] sm:$0xf] %vm856_vm0, %v1313_v45  ;;  %v1472_v47 = vunpack.i.h.bf16 %v1468_v46  ;;  %v1469_v48 = vunpack.i.l.bf16 %v1468_v46 }
 0x20d   : > { %v1334_v49 = vpack.c.bf16 %v1472_v47, %v1472_v47  ;;  %v1314_v50 = vpack.c.bf16 %v1469_v48, %v1469_v48 }
 0x20e   : > { %v1473_v51 = vpop.trf.xlu0 }
 0x20f   : > { %1283 = vst.msk [vmem:[%s2059_s12 + $0x48] sm:$0xf] %vm856_vm0, %v1334_v49  ;;  %859 = vst.msk [vmem:[%s2059_s12 + $0x8] sm:$0xf] %vm856_vm0, %v1314_v50  ;;  %v1477_v52 = vunpack.i.h.bf16 %v1473_v51  ;;  %v1474_v53 = vunpack.i.l.bf16 %v1473_v51 }
 0x211   : > { %v1335_v54 = vpack.c.bf16 %v1477_v52, %v1477_v52  ;;  %v1315_v55 = vpack.c.bf16 %v1474_v53, %v1474_v53 }
 0x212   : > { %v1478_v56 = vpop.trf.xlu0 }
 0x213   : > { %1284 = vst.msk [vmem:[%s2059_s12 + $0x4c] sm:$0xf] %vm856_vm0, %v1335_v54  ;;  %860 = vst.msk [vmem:[%s2059_s12 + $0xc] sm:$0xf] %vm856_vm0, %v1315_v55  ;;  %v1482_v57 = vunpack.i.h.bf16 %v1478_v56  ;;  %v1479_v58 = vunpack.i.l.bf16 %v1478_v56 }
 0x215   : > { %v1336_v59 = vpack.c.bf16 %v1482_v57, %v1482_v57  ;;  %v1316_v60 = vpack.c.bf16 %v1479_v58, %v1479_v58 }
 0x216   : > { %v1483_v61 = vpop.trf.xlu0 }
 0x217   : > { %1285 = vst.msk [vmem:[%s2059_s12 + $0x50] sm:$0xf] %vm856_vm0, %v1336_v59  ;;  %861 = vst.msk [vmem:[%s2059_s12 + $0x10] sm:$0xf] %vm856_vm0, %v1316_v60  ;;  %v1487_v62 = vunpack.i.h.bf16 %v1483_v61  ;;  %v1484_v63 = vunpack.i.l.bf16 %v1483_v61 }
 0x219   : > { %v1337_v0 = vpack.c.bf16 %v1487_v62, %v1487_v62  ;;  %v1317_v1 = vpack.c.bf16 %v1484_v63, %v1484_v63 }
 0x21a   : > { %v1488_v2 = vpop.trf.xlu0 }
 0x21b   : > { %1286 = vst.msk [vmem:[%s2059_s12 + $0x54] sm:$0xf] %vm856_vm0, %v1337_v0  ;;  %862 = vst.msk [vmem:[%s2059_s12 + $0x14] sm:$0xf] %vm856_vm0, %v1317_v1  ;;  %v1492_v3 = vunpack.i.h.bf16 %v1488_v2  ;;  %v1489_v4 = vunpack.i.l.bf16 %v1488_v2 }
 0x21d   : > { %v1338_v5 = vpack.c.bf16 %v1492_v3, %v1492_v3  ;;  %v1318_v6 = vpack.c.bf16 %v1489_v4, %v1489_v4 }
 0x21e   : > { %v1493_v7 = vpop.trf.xlu0 }
 0x21f   : > { %1287 = vst.msk [vmem:[%s2059_s12 + $0x58] sm:$0xf] %vm856_vm0, %v1338_v5  ;;  %863 = vst.msk [vmem:[%s2059_s12 + $0x18] sm:$0xf] %vm856_vm0, %v1318_v6  ;;  %v1497_v8 = vunpack.i.h.bf16 %v1493_v7  ;;  %v1494_v9 = vunpack.i.l.bf16 %v1493_v7 }
 0x221   : > { %v1339_v10 = vpack.c.bf16 %v1497_v8, %v1497_v8  ;;  %v1319_v11 = vpack.c.bf16 %v1494_v9, %v1494_v9 }
 0x222   : > { %v1498_v12 = vpop.trf.xlu0 }
 0x223   : > { %1288 = vst.msk [vmem:[%s2059_s12 + $0x5c] sm:$0xf] %vm856_vm0, %v1339_v10  ;;  %864 = vst.msk [vmem:[%s2059_s12 + $0x1c] sm:$0xf] %vm856_vm0, %v1319_v11  ;;  %v1502_v13 = vunpack.i.h.bf16 %v1498_v12  ;;  %v1499_v14 = vunpack.i.l.bf16 %v1498_v12 }
 0x225   : > { %v1340_v15 = vpack.c.bf16 %v1502_v13, %v1502_v13  ;;  %v1320_v16 = vpack.c.bf16 %v1499_v14, %v1499_v14 }
 0x226   : > { %v1503_v17 = vpop.trf.xlu0 }
 0x227   : > { %1289 = vst.msk [vmem:[%s2059_s12 + $0x60] sm:$0xf] %vm856_vm0, %v1340_v15  ;;  %865 = vst.msk [vmem:[%s2059_s12 + $0x20] sm:$0xf] %vm856_vm0, %v1320_v16  ;;  %v1507_v18 = vunpack.i.h.bf16 %v1503_v17  ;;  %v1504_v19 = vunpack.i.l.bf16 %v1503_v17 }
 0x229   : > { %v1341_v20 = vpack.c.bf16 %v1507_v18, %v1507_v18  ;;  %v1321_v21 = vpack.c.bf16 %v1504_v19, %v1504_v19 }
 0x22a   : > { %v1508_v22 = vpop.trf.xlu0 }
 0x22b   : > { %1290 = vst.msk [vmem:[%s2059_s12 + $0x64] sm:$0xf] %vm856_vm0, %v1341_v20  ;;  %866 = vst.msk [vmem:[%s2059_s12 + $0x24] sm:$0xf] %vm856_vm0, %v1321_v21  ;;  %v1512_v23 = vunpack.i.h.bf16 %v1508_v22  ;;  %v1509_v24 = vunpack.i.l.bf16 %v1508_v22 }
 0x22d   : > { %v1342_v25 = vpack.c.bf16 %v1512_v23, %v1512_v23  ;;  %v1322_v26 = vpack.c.bf16 %v1509_v24, %v1509_v24 }
 0x22e   : > { %v1513_v27 = vpop.trf.xlu0 }
 0x22f   : > { %1291 = vst.msk [vmem:[%s2059_s12 + $0x68] sm:$0xf] %vm856_vm0, %v1342_v25  ;;  %867 = vst.msk [vmem:[%s2059_s12 + $0x28] sm:$0xf] %vm856_vm0, %v1322_v26  ;;  %v1517_v28 = vunpack.i.h.bf16 %v1513_v27  ;;  %v1514_v29 = vunpack.i.l.bf16 %v1513_v27 }
 0x231   : > { %v1343_v30 = vpack.c.bf16 %v1517_v28, %v1517_v28  ;;  %v1323_v31 = vpack.c.bf16 %v1514_v29, %v1514_v29 }
 0x232   : > { %v1518_v32 = vpop.trf.xlu0 }
 0x233   : > { %1292 = vst.msk [vmem:[%s2059_s12 + $0x6c] sm:$0xf] %vm856_vm0, %v1343_v30  ;;  %868 = vst.msk [vmem:[%s2059_s12 + $0x2c] sm:$0xf] %vm856_vm0, %v1323_v31  ;;  %v1522_v33 = vunpack.i.h.bf16 %v1518_v32  ;;  %v1519_v34 = vunpack.i.l.bf16 %v1518_v32 }
 0x235   : > { %v1344_v35 = vpack.c.bf16 %v1522_v33, %v1522_v33  ;;  %v1324_v36 = vpack.c.bf16 %v1519_v34, %v1519_v34 }
 0x236   : > { %v1523_v37 = vpop.trf.xlu0 }
 0x237   : > { %1293 = vst.msk [vmem:[%s2059_s12 + $0x70] sm:$0xf] %vm856_vm0, %v1344_v35  ;;  %869 = vst.msk [vmem:[%s2059_s12 + $0x30] sm:$0xf] %vm856_vm0, %v1324_v36  ;;  %v1527_v38 = vunpack.i.h.bf16 %v1523_v37  ;;  %v1524_v39 = vunpack.i.l.bf16 %v1523_v37 }
 0x239   : > { %v1345_v40 = vpack.c.bf16 %v1527_v38, %v1527_v38  ;;  %v1325_v41 = vpack.c.bf16 %v1524_v39, %v1524_v39 }
 0x23a   : > { %v1528_v42 = vpop.trf.xlu0 }
 0x23b   : > { %1294 = vst.msk [vmem:[%s2059_s12 + $0x74] sm:$0xf] %vm856_vm0, %v1345_v40  ;;  %870 = vst.msk [vmem:[%s2059_s12 + $0x34] sm:$0xf] %vm856_vm0, %v1325_v41  ;;  %v1532_v43 = vunpack.i.h.bf16 %v1528_v42  ;;  %v1529_v44 = vunpack.i.l.bf16 %v1528_v42 }
 0x23d   : > { %v1346_v45 = vpack.c.bf16 %v1532_v43, %v1532_v43  ;;  %v1326_v46 = vpack.c.bf16 %v1529_v44, %v1529_v44 }
 0x23e   : > { %v1533_v47 = vpop.trf.xlu0 }
 0x23f   : > { %1295 = vst.msk [vmem:[%s2059_s12 + $0x78] sm:$0xf] %vm856_vm0, %v1346_v45  ;;  %871 = vst.msk [vmem:[%s2059_s12 + $0x38] sm:$0xf] %vm856_vm0, %v1326_v46  ;;  %v1537_v48 = vunpack.i.h.bf16 %v1533_v47  ;;  %v1534_v49 = vunpack.i.l.bf16 %v1533_v47 }
 0x241   : > { %v1347_v50 = vpack.c.bf16 %v1537_v48, %v1537_v48  ;;  %v1327_v51 = vpack.c.bf16 %v1534_v49, %v1534_v49 }
 0x243   : > { %1296 = vst.msk [vmem:[%s2059_s12 + $0x7c] sm:$0xf] %vm856_vm0, %v1347_v50  ;;  %872 = vst.msk [vmem:[%s2059_s12 + $0x3c] sm:$0xf] %vm856_vm0, %v1327_v51 }
 0x244 PF: > { %s1072_s19 = sand.u32 1, %s1778_s15   ;;  %p2162_p0 = scmp.ne.s32.totalorder %s2152_s22, 0 }
 0x245   : > { %p2163_p9 = scmp.ge.s32.totalorder %s1790_s18, 2  ;;  %s1073_s13 = scalar_lea.sflag [#allocation4], %s1072_s19 }
 0x247   : > { %p1400_p12 = pnand %p2163_p9, %p2162_p0 }
 0x249   : > { %1773 = dma.done.wait (!%p1400_p12), %s1073_s13, 512  }
 0x24a   : > { %1775 = vsyncadd (!%p1400_p12), %s1073_s13, 4294966784  ;;  %p19_p2 = scmp.ge.s32.totalorder %s1937_s9, 4   ;;  %s2164_s15 = smov %s1782_s16 }
 0x24b   : > { %s2165_s16 = smov %s1786_s17  ;;  %s2166_s17 = smov %s1953_s14 }
 0x24c   : > { %s2167_s18 = smov %s1937_s9  ;;  %21 = sbr.rel (!%p19_p2) target bundleno = 6 (0x6), region = 99 }
 0x253   :  { %1078 = vsyncpa [#allocation3], 1 }
 0x254   :  { %1080 = vsyncpa [#allocation3 + $0x1], 1 }
 0x255   :  { %1081 = vsyncpa [#allocation6], 1 }
 0x256   :  { %1082 = vsyncpa [#allocation4], 1 }
 0x257   :  { %1084 = vsyncpa [#allocation4 + $0x1], 1 }

</bundles_post_ra>
